<compile_context>
chip_gen: v7x
topology: tpu7x:2x2x1
jax: 0.10.0
libtpu: 0.0.40
codegen_flags: <defaults>
</compile_context>

<pallas_src>
from functools import partial

import jax
import jax.numpy as jnp
from jax.experimental import pallas as pl
from jax.experimental.pallas import tpu as pltpu


def _round_up(x, m):
    return ((x + m - 1) // m) * m


def _critic_kernel(x_ref, slab_ref, out_ref, *, n_in, gp, b_row, head_row):
    """Fused single-step bidirectional LSTM cell + critic linear head (one B-tile).

    slab layout (rows, all f32, lane width 3*GP):
      rows [0, n_in)      : W packed as (I, 3*GP), gate blocks [ i | o | g ],
                            each block GP lanes wide, valid data in lanes [0, D*H)
      row  b_row          : folded bias (b_ih + b_hh), same gate-block layout
      row  head_row       : critic weights in lanes [0, D*H); critic bias at lane GP
    """
    x = x_ref[...]                                                    # (tb, I)

    w = slab_ref[0:n_in, :]                                           # (I, 3*GP)
    b = slab_ref[b_row:b_row + 1, :]                                  # (1, 3*GP)
    gates = jnp.dot(x, w, preferred_element_type=jnp.float32) + b     # (tb, 3*GP)

    # Gate slices are lane-tile aligned (multiples of 128) — no cross-lane moves.
    i = jax.nn.sigmoid(gates[:, 0 * gp:1 * gp])      # input gates, both directions
    o = jax.nn.sigmoid(gates[:, 1 * gp:2 * gp])      # output gates, both directions
    g = jnp.tanh(gates[:, 2 * gp:3 * gp])            # cell candidates, both dirs

    h = o * jnp.tanh(i * g)                          # (tb, GP); padded lanes == 0
                                                     # lanes [0,D*H) == concat(h_fwd,h_bwd)

    # Critic head, lane-dense: (1, GP) x (tb, GP)^T -> (1, tb).
    wc = slab_ref[head_row:head_row + 1, 0:gp]                        # (1, GP)
    bc = slab_ref[head_row:head_row + 1, gp:gp + 1]                   # (1, 1)
    val = jax.lax.dot_general(
        wc, h,
        dimension_numbers=(((1,), (1,)), ((), ())),
        preferred_element_type=jnp.float32)                           # (1, tb)
    out_ref[...] = (val + bc).astype(out_ref.dtype)


def pack_params(w_ih, b_ih, b_hh, w_crit, b_crit, num_hidden):
    """Host-side glue: fold the two LSTM biases, drop the dead f gate, pack both
    directions feature-last into 128-lane-aligned [ i | o | g ] blocks, and merge
    everything (W, bias, critic weight, critic bias) into one f32 slab."""
    D, _, I = w_ih.shape
    H = num_hidden
    dh = D * H
    gp = _round_up(dh, 128)           # per-gate lane block, 128-aligned
    b_row = _round_up(I, 8)           # bias row, sublane-group aligned
    head_row = b_row + 8              # critic-head row, sublane-group aligned
    n_rows = head_row + 8

    w_ih = w_ih.astype(jnp.float32)
    bias = (b_ih + b_hh).astype(jnp.float32)                          # (D, 4H)

    def w_block(k):   # gate k (PyTorch order i,f,g,o), both dirs, padded to GP lanes
        wk = w_ih[:, k * H:(k + 1) * H, :].reshape(dh, I)             # dir-major
        blk = jnp.zeros((I, gp), jnp.float32)
        return blk.at[:, :dh].set(wk.T)

    def b_block(k):
        bk = bias[:, k * H:(k + 1) * H].reshape(dh)
        return jnp.zeros((gp,), jnp.float32).at[:dh].set(bk)

    # Gate blocks [ i | o | g ]; the forget gate is not even packed.
    w_rows = jnp.concatenate([w_block(0), w_block(3), w_block(2)], axis=1)   # (I, 3GP)
    b_vec = jnp.concatenate([b_block(0), b_block(3), b_block(2)], axis=0)    # (3GP,)

    head = jnp.zeros((3 * gp,), jnp.float32)
    head = head.at[:dh].set(w_crit.reshape(dh).astype(jnp.float32))
    head = head.at[gp].set(b_crit.reshape(()).astype(jnp.float32))

    slab = jnp.zeros((n_rows, 3 * gp), jnp.float32)
    slab = slab.at[:I, :].set(w_rows)
    slab = slab.at[b_row, :].set(b_vec)
    slab = slab.at[head_row, :].set(head)

    return {"slab": slab, "n_in": I, "gp": gp, "b_row": b_row, "head_row": head_row}


def critic_forward_batch(states, params):
    """Batched CriticLayer.forward: states (B, I) -> critic values (B,)."""
    x = states.astype(jnp.float32)
    B, I = x.shape
    assert I == params["n_in"], (I, params["n_in"])
    slab = params["slab"]
    gp, b_row, head_row = params["gp"], params["b_row"], params["head_row"]

    tb = 128 if B >= 128 else _round_up(B, 8)     # sublane-aligned batch tile
    b_pad = _round_up(B, tb)
    if b_pad != B:
        x = jnp.pad(x, ((0, b_pad - B), (0, 0)))  # padded rows are inert, sliced off
    n_tiles = b_pad // tb

    out = pl.pallas_call(
        partial(_critic_kernel, n_in=I, gp=gp, b_row=b_row, head_row=head_row),
        out_shape=jax.ShapeDtypeStruct((1, b_pad), jnp.float32),
        grid_spec=pltpu.PrefetchScalarGridSpec(
            num_scalar_prefetch=0,
            grid=(n_tiles,),
            in_specs=[
                pl.BlockSpec((tb, I), lambda i: (i, 0)),         # B-tiled states
                pl.BlockSpec(slab.shape, lambda i: (0, 0)),      # params stay resident
            ],
            out_specs=pl.BlockSpec((1, tb), lambda i: (0, i)),   # lane-dense output
        ),
        compiler_params=pltpu.CompilerParams(
            dimension_semantics=("parallel",)),                  # shard tiles on v7x TCs
    )(x, slab)
    return out[0, :B]


def critic_forward(input_state, sampled_values, params):
    """Single-state CriticLayer.forward — matches the module's (1,) output."""
    # torch.cat(sampled_values + [input_state], dim=0) — plain-JAX glue.
    current_state = jnp.concatenate(list(sampled_values) + [input_state], axis=0)
    return critic_forward_batch(current_state[None, :], params)   # shape (1,)


def _reference_batch(states, w_ih, b_ih, b_hh, w_crit, b_crit, H):
    """Pure-JAX reference of the full CriticLayer forward (all gates kept)."""
    outs = []
    for d in range(w_ih.shape[0]):
        gates = states @ w_ih[d].T + b_ih[d] + b_hh[d]   # W_hh @ h0 == 0
        i = jax.nn.sigmoid(gates[:, 0 * H:1 * H])
        f = jax.nn.sigmoid(gates[:, 1 * H:2 * H])
        g = jnp.tanh(gates[:, 2 * H:3 * H])
        o = jax.nn.sigmoid(gates[:, 3 * H:4 * H])
        c = f * 0.0 + i * g                              # c0 == 0
        h = o * jnp.tanh(c)
        outs.append(h)
    emb = jnp.concatenate(outs, axis=-1)                 # (B, D*H)
    return emb @ w_crit.T + b_crit                       # (B, 1)


if __name__ == "__main__":
    num_inputs, num_extra_inputs, num_hidden = 12, 4, 32
    bidirectional = True
    D = 2 if bidirectional else 1
    I = num_inputs + num_extra_inputs
    H = num_hidden
    B = 256                                  # batch of states (amortizes launch/DMA)

    key = jax.random.PRNGKey(0)
    ks = jax.random.split(key, 8)
    bound = 1.0 / (H ** 0.5)

    # nn.LSTM params per direction: weight_ih (4H, I), weight_hh (4H, H),
    # bias_ih (4H,), bias_hh (4H,).  weight_hh is inert (seq_len=1, h0=0).
    w_ih = jax.random.uniform(ks[0], (D, 4 * H, I), jnp.float32, -bound, bound)
    w_hh = jax.random.uniform(ks[1], (D, 4 * H, H), jnp.float32, -bound, bound)
    b_ih = jax.random.uniform(ks[2], (D, 4 * H), jnp.float32, -bound, bound)
    b_hh = jax.random.uniform(ks[3], (D, 4 * H), jnp.float32, -bound, bound)

    lin_bound = 1.0 / ((D * H) ** 0.5)
    w_crit = jax.random.uniform(ks[4], (1, D * H), jnp.float32, -lin_bound, lin_bound)
    b_crit = jax.random.uniform(ks[5], (1,), jnp.float32, -lin_bound, lin_bound)

    input_states = jax.random.normal(ks[6], (B, num_inputs), jnp.float32)
    sampled = jax.random.normal(ks[7], (B, num_extra_inputs), jnp.float32)

    # Per-state torch.cat(sampled_values + [input_state], dim=0), batched.
    states = jnp.concatenate([sampled, input_states], axis=1)          # (B, I)

    params = pack_params(w_ih, b_ih, b_hh, w_crit, b_crit, H)

    out = jax.block_until_ready(critic_forward_batch(states, params))  # (B,)
    ref = _reference_batch(states, w_ih, b_ih, b_hh, w_crit, b_crit, H)  # (B, 1)

    assert out.shape == (B,), out.shape
    assert jnp.allclose(out, ref[:, 0], atol=5e-5, rtol=5e-5), \
        float(jnp.max(jnp.abs(out - ref[:, 0])))

    # Single-state path: same (1,) shape/value as the original PyTorch module.
    single = jax.block_until_ready(
        critic_forward(input_states[0], [sampled[0]], params))
    assert single.shape == (1,), single.shape
    assert jnp.allclose(single, ref[0], atol=5e-5, rtol=5e-5), \
        float(jnp.max(jnp.abs(single - ref[0])))

    print("KERNEL_OK")
</pallas_src>

<mosaic_0001>
module attributes {stable_mosaic.version = 11 : i64} {
  func.func @_critic_kernel(%arg0: i32, %arg1: memref<128x16xf32, #tpu.memory_space<vmem>>, %arg2: memref<32x384xf32, #tpu.memory_space<vmem>>, %arg3: memref<1x128xf32, #tpu.memory_space<vmem>>) attributes {dimension_semantics = [#tpu.dimension_semantics<parallel>], iteration_bounds = array<i64: 2>, scalar_prefetch = 0 : i64, scratch_operands = 0 : i64, tpu.core_type = #tpu.core_type<tc>, window_params = [{transform_indices = @transform_0, window_bounds = array<i64: 128, 16>}, {pipeline_mode = #tpu.pipeline_mode<synchronous>, transform_indices = @transform_1, window_bounds = array<i64: 32, 384>}, {transform_indices = @transform_2, window_bounds = array<i64: 1, 128>}]} {
    %c0 = arith.constant 0 : index
    %c0_0 = arith.constant 0 : index
    %0 = vector.load %arg1[%c0, %c0_0] : memref<128x16xf32, #tpu.memory_space<vmem>>, vector<128x16xf32>
    %c0_1 = arith.constant 0 : index
    %c0_2 = arith.constant 0 : index
    %1 = vector.load %arg2[%c0_1, %c0_2] : memref<32x384xf32, #tpu.memory_space<vmem>>, vector<16x384xf32>
    %c16 = arith.constant 16 : index
    %c0_3 = arith.constant 0 : index
    %2 = vector.load %arg2[%c16, %c0_3] : memref<32x384xf32, #tpu.memory_space<vmem>>, vector<1x384xf32>
    %cst = arith.constant dense<0.000000e+00> : vector<128x384xf32>
    %3 = tpu.matmul %0, %1, %cst {dimension_numbers = #tpu.dot_dimension_numbers<[1], [0], [0], [1], [0, 0, 1, 1], [], []>} : vector<128x16xf32>, vector<16x384xf32>, vector<128x384xf32> -> vector<128x384xf32>
    %4 = vector.broadcast %2 : vector<1x384xf32> to vector<128x384xf32>
    %5 = arith.addf %3, %4 : vector<128x384xf32>
    %6 = vector.extract_strided_slice %5 {offsets = [0, 0], sizes = [128, 128], strides = [1, 1]} : vector<128x384xf32> to vector<128x128xf32>
    %7 = arith.negf %6 : vector<128x128xf32>
    %8 = math.exp %7 : vector<128x128xf32>
    %cst_4 = arith.constant 1.000000e+00 : f32
    %9 = vector.broadcast %cst_4 : f32 to vector<128x128xf32>
    %10 = arith.addf %9, %8 : vector<128x128xf32>
    %11 = arith.divf %9, %10 : vector<128x128xf32>
    %12 = vector.extract_strided_slice %5 {offsets = [0, 128], sizes = [128, 128], strides = [1, 1]} : vector<128x384xf32> to vector<128x128xf32>
    %13 = arith.negf %12 : vector<128x128xf32>
    %14 = math.exp %13 : vector<128x128xf32>
    %cst_5 = arith.constant 1.000000e+00 : f32
    %15 = vector.broadcast %cst_5 : f32 to vector<128x128xf32>
    %16 = arith.addf %15, %14 : vector<128x128xf32>
    %17 = arith.divf %15, %16 : vector<128x128xf32>
    %18 = vector.extract_strided_slice %5 {offsets = [0, 256], sizes = [128, 128], strides = [1, 1]} : vector<128x384xf32> to vector<128x128xf32>
    %19 = math.tanh %18 : vector<128x128xf32>
    %20 = arith.mulf %11, %19 : vector<128x128xf32>
    %21 = math.tanh %20 : vector<128x128xf32>
    %22 = arith.mulf %17, %21 : vector<128x128xf32>
    %c24 = arith.constant 24 : index
    %c0_6 = arith.constant 0 : index
    %23 = vector.load %arg2[%c24, %c0_6] : memref<32x384xf32, #tpu.memory_space<vmem>>, vector<1x128xf32>
    %c24_7 = arith.constant 24 : index
    %c128 = arith.constant 128 : index
    %24 = vector.load %arg2[%c24_7, %c128] : memref<32x384xf32, #tpu.memory_space<vmem>>, vector<1x1xf32>
    %cst_8 = arith.constant dense<0.000000e+00> : vector<1x128xf32>
    %25 = tpu.matmul %23, %22, %cst_8 {dimension_numbers = #tpu.dot_dimension_numbers<[1], [1], [0], [0], [0, 0, 1, 0], [], []>} : vector<1x128xf32>, vector<128x128xf32>, vector<1x128xf32> -> vector<1x128xf32>
    %26 = vector.broadcast %24 : vector<1x1xf32> to vector<1x128xf32>
    %27 = arith.addf %25, %26 : vector<1x128xf32>
    %c0_9 = arith.constant 0 : index
    %c0_10 = arith.constant 0 : index
    %28 = vector.load %arg3[%c0_9, %c0_10] : memref<1x128xf32, #tpu.memory_space<vmem>>, vector<1x128xf32>
    tpu.vector_store %arg3[%c0_9, %c0_10], %27 {strides = array<i32>} : memref<1x128xf32, #tpu.memory_space<vmem>>, vector<1x128xf32>,
    return
  }
  func.func @transform_0(%arg0: i32) -> (i32, i32) {
    %c0_i32 = arith.constant 0 : i32
    %c0_i32_0 = arith.constant 0 : i32
    return %arg0, %c0_i32 : i32, i32
  }
  func.func @transform_1(%arg0: i32) -> (i32, i32) {
    %c0_i32 = arith.constant 0 : i32
    %c0_i32_0 = arith.constant 0 : i32
    %c0_i32_1 = arith.constant 0 : i32
    return %c0_i32, %c0_i32_0 : i32, i32
  }
  func.func @transform_2(%arg0: i32) -> (i32, i32) {
    %c0_i32 = arith.constant 0 : i32
    %c0_i32_0 = arith.constant 0 : i32
    return %c0_i32, %arg0 : i32, i32
  }
}

</mosaic_0001>

<bundles_post_ra>
// kernel: tpu_custom_call.1
= control target key start
LH: loop header
LB: loop body
LE: loop exit
PB: predicated region body
PF: predicated region fallthrough
CT: control target
= control target key end

     0   :  { %7 = vsyncpa [#allocation3], 0  ;;  %s1782_s0 = inlined_call_operand.vmem [shape: f32[256,16], index: 0, kind: input, shape index: {}]   ;;  %s1783_s1 = inlined_call_operand.vmem [shape: f32[32,384], index: 1, kind: input, shape index: {}]   ;;  %s1784_s2 = inlined_call_operand.hbm [shape: f32[1,256], index: 2, kind: output, shape index: {}]  }
   0x1   :  { %9 = vsyncpa [#allocation3 + $0x1], 0  ;;  %s1464_s9 = smov 0   ;;  %s1466_s10 = smov 0  }
   0x2   :  { %s1468_s11 = smov 0   ;;  %s1470_s12 = smov 0  }
   0x3 LB: > { %s939_s13 = sadd.s32 4294967295, %s1442_s12   ;;  %s940_s14 = sadd.s32 4294967294, %s1442_s12   ;;  %s1442_s12 = sphi %s1470_s12, %s1790_s12   ;;  %s1438_s11 = sphi %s1468_s11, %s1789_s11   ;;  %s1434_s10 = sphi %s1466_s10, %s1788_s10   ;;  %s1430_s9 = sphi %s1464_s9, %s1787_s9  }
   0x4   : > { %s1487_s15 = sadd.s32 1, %s1442_s12   ;;  %s69_s16 = sadd.s32 1, %s1438_s11 }
   0x5   : > { %s66_s17 = ssub.s32 %s1442_s12, %s1487_s15  ;;  %p79_p0 = scmp.ne.s32.totalorder %s1438_s11, %s1434_s10 }
   0x6   : > { %p67_p1 = scmp.eq.s32.totalorder %s66_s17, 0  ;;  %p80_p2 = scmp.eq.s32.totalorder %s939_s13, 1 }
   0x7   : > { %p85_p3 = scmp.ne.s32.totalorder %s1434_s10, %s1430_s9  ;;  %p86_p4 = scmp.eq.s32.totalorder %s940_s14, 1 }
   0x8   : > { %s1497_s18 = scalar_select %p67_p1, %s1438_s11, %s69_s16  }
   0x9   : > { %p1499_p5 = por %p80_p2, %p79_p0  ;;  %p1503_p6 = por %p86_p4, %p85_p3 }
   0xa   : > { %p943_p7 = scmp.ge.s32.totalorder %s1442_s12, 1  ;;  %p116_p8 = scmp.lt.s32.totalorder %s1442_s12, 3 }
   0xc   : > { %p117_p9 = pnand %p943_p7, %p116_p8 }
   0xd   : > { %v160_v0 = vld [vmem:[%s1783_s1 + $0x8] sm:$0xff] (!%p117_p9)  ;;  %v163_v1 = vld [vmem:[%s1783_s1 + $0x20] sm:$0xff] (!%p117_p9)  ;;  %s1518_s27 = sshll.u32 (!%p117_p9), %s939_s13, 4  ;;  %v162_v4 = vld [vmem:[%s1783_s1 + $0x18] sm:$0xff] (!%p117_p9)  ;;  %v1444_v5 = vmov (!%p117_p9), 0.0   ;;  %vm183_vm0 = vcmask (!%p117_p9), 130048   ;;  %v168_v27 = vlaneseq (!%p117_p9) }
   0xe   : > { %120 = sbr.rel (%p117_p9) target bundleno = 595 (0x253), region = 28  ;;  %v159_v2 = vld [vmem:[%s1783_s1] sm:$0xff] (!%p117_p9)  ;;  %v1112_v3 = vpack.c.bf16 (!%p117_p9), %v163_v1, %v160_v0  ;;  %296 = vmatprep.mubr.f32.mxu0 (!%p117_p9), %v1444_v5  ;;  %p138_p10 = scmp.lt.s32.totalorder (!%p117_p9), %s1518_s27, 31  ;;  %v161_v6 = vld [vmem:[%s1783_s1 + $0x10] sm:$0xff] (!%p117_p9)  ;;  %v164_v7 = vld [vmem:[%s1783_s1 + $0x28] sm:$0xff] (!%p117_p9)  ;;  %v1445_v26 = vmov (!%p117_p9), 0.0|0.0  }
   0xf   : > { %v1114_v8 = vpack.c.bf16 (!%p117_p9), %v162_v4, %v159_v2  ;;  %v1116_v9 = vpack.c.bf16 (!%p117_p9), %v164_v7, %v161_v6  ;;  %v169_v28 = vshrl.u32 (!%p117_p9), %v168_v27, 7  ;;  %v946_v30 = vld [vmem:[%s1783_s1 + $0x30] ss:$8 sm:$0x7] (!%p117_p9)  ;;  %vm1446_vm1 = vmmov (!%p117_p9), 0   ;;  %s135_s25 = sand.u32 (!%p117_p9), 1, %s1434_s10   ;;  %s1740_s3 = scalar_lea.hbm (!%p117_p9), %s1784_s2, %s1518_s27 }
  0x10   : > { %1113 = vmatprep.subr.bf16.mxu0 (!%p117_p9), %v1112_v3  ;;  %v795_v42 = vld [vmem:[%s1783_s1 + $0x50] ss:$0 sm:$0xff] (!%p117_p9)  ;;  %v1447_v45 = vmov (!%p117_p9), 0   ;;  %s136_s26 = scalar_lea.vmem (!%p117_p9), [#allocation2], %s135_s25  ;;  %s873_s4 = scalar_lea.sflag (!%p117_p9), [#allocation3], %s135_s25 }
  0x11   : > { %1115 = vmatpush1.bf16.msra.mxu0 (!%p117_p9), %v1114_v8  ;;  %1117 = vmatprep.subr.bf16.mxu1 (!%p117_p9), %v1116_v9  ;;  %v170_v29 = vsub.s32 (!%p117_p9), 0, %v169_v28  ;;  %v174_v31 = vsub.s32 (!%p117_p9), 1, %v169_v28  ;;  %v178_v32 = vsub.s32 (!%p117_p9), 2, %v169_v28  ;;  %s885_s28 = sshll.u32 (!%p117_p9), %s136_s26, 4  ;;  %s1742_s28 = int_to_ptr.vmem [resolvable:$true] %s885_s28 }
  0x12   : > { %1119 = vmatpush3.bf16.msra.mxu1 (!%p117_p9), %v1116_v9  ;;  %1120 = vmatprep.subr.bf16.mxu0 (!%p117_p9), %v1445_v26  ;;  %s1380_s5 = scalar_lea.vmem (!%p117_p9), %s1742_s28, 16 }
  0x13   : > { %v1605_v33 = vrot.slane (!%p117_p9), %v946_v30, %v170_v29  ;;  %v1607_v34 = vrot.slane (!%p117_p9), %v946_v30, %v174_v31  ;;  %v1609_v36 = vrot.slane (!%p117_p9), %v946_v30, %v178_v32  ;;  %1187 = vset.pattern.permute.xlu0 (!%p117_p9), %v1447_v45  ;;  %p1381_p11 = scmp.ne.s32.totalorder (!%p117_p9), %s1742_s28, %s1380_s5 }
  0x14   : > { %798 = vperm.xlu0 (!%p117_p9), %1187, %v795_v42  }
  0x15   : > { %s139_s6 = scalar_select %p138_p10, %s1518_s27, 31 }
  0x16   : > { %p1382_p12 = pnand %p1381_p11, %p1499_p5 }
  0x17   : > { %s945_s7 = sshll.u32 %s139_s6, 3  ;;  %s1448_s6 = smov [#allocation2]  }
  0x18   : > { %s1535_s14 = scalar_lea.vmem %s1782_s0, %s945_s7  ;;  %p1383_p13 = pneg %p1382_p12 }
  0x19   : > { %v143_v10 = vld [vmem:[%s1535_s14] sm:$0xff]  ;;  %v144_v11 = vld [vmem:[%s1535_s14 + $0x8] sm:$0xff]  ;;  %v145_v12 = vld [vmem:[%s1535_s14 + $0x10] sm:$0xff]  ;;  %s1384_s7 = sshll.u32 %s1448_s6, 4  ;;  %s1385_s7 = int_to_ptr.vmem [resolvable:$false] %s1384_s7 }
  0x1a   : > { %947 = vmatmul.mubr.msk.f32.vlgmr.msra.gmra.mrb[0].mxu0 %vm183_vm0, %v143_v10  ;;  %1053 = vmatprep.mubr.msk.f32.mxu1 %vm183_vm0, %v143_v10  ;;  %v146_v13 = vld [vmem:[%s1535_s14 + $0x18] sm:$0xff]  ;;  %v147_v14 = vld [vmem:[%s1535_s14 + $0x20] sm:$0xff]  ;;  %v148_v15 = vld [vmem:[%s1535_s14 + $0x28] sm:$0xff]  ;;  %s1386_s8 = scalar_lea.vmem %s1385_s7, 32  ;;  %p1387_p0 = scmp.lt.s32.totalorder %s1742_s28, %s1385_s7 }
  0x1b   : > { %302 = vmatprep.mubr.f32.mxu0 %v1444_v5  ;;  %1054 = vmatmul.mubr.msk.f32.vlgmr.msra.gmra.mrb[0].mxu1 %vm183_vm0, %v144_v11  ;;  %v149_v16 = vld [vmem:[%s1535_s14 + $0x30] sm:$0xff]  ;;  %v150_v17 = vld [vmem:[%s1535_s14 + $0x38] sm:$0xff]  ;;  %v151_v18 = vld [vmem:[%s1535_s14 + $0x40] sm:$0xff]  ;;  %p1388_p1 = scmp.lt.s32.totalorder %s1386_s8, %s1380_s5 }
  0x1c   : > { %1056 = vmatprep.mubr.msk.f32.mxu1 %vm183_vm0, %v145_v12  ;;  %v152_v19 = vld [vmem:[%s1535_s14 + $0x48] sm:$0xff]  ;;  %v153_v20 = vld [vmem:[%s1535_s14 + $0x50] sm:$0xff]  ;;  %v154_v21 = vld [vmem:[%s1535_s14 + $0x58] sm:$0xff] }
  0x1d   : > { %v155_v22 = vld [vmem:[%s1535_s14 + $0x60] sm:$0xff]  ;;  %v156_v23 = vld [vmem:[%s1535_s14 + $0x68] sm:$0xff]  ;;  %v157_v24 = vld [vmem:[%s1535_s14 + $0x70] sm:$0xff]  ;;  %p1389_p2 = por %p1388_p1, %p1387_p0 }
  0x1e   : > { %948 = vmatmul.mubr.msk.f32.gmra.mrb[2].mxu0 %vm183_vm0, %v144_v11  ;;  %v158_v25 = vld [vmem:[%s1535_s14 + $0x78] sm:$0xff] }
  0x1f   : > { %308 = vmatprep.mubr.f32.mxu0 %v1444_v5  ;;  %1057 = vmatmul.mubr.msk.f32.gmra.mrb[2].mxu1 %vm183_vm0, %v146_v13  ;;  %p1390_p3 = pnand %p1389_p2, %p1383_p13 }
  0x20   : > { %1059 = vmatprep.mubr.msk.f32.mxu1 %vm183_vm0, %v147_v14 }
  0x22   : > { %949 = vmatmul.mubr.msk.f32.gmra.mrb[4].mxu0 %vm183_vm0, %v145_v12 }
  0x23   : > { %314 = vmatprep.mubr.f32.mxu0 %v1444_v5  ;;  %1060 = vmatmul.mubr.msk.f32.gmra.mrb[4].mxu1 %vm183_vm0, %v148_v15 }
  0x24   : > { %1062 = vmatprep.mubr.msk.f32.mxu1 %vm183_vm0, %v149_v16 }
  0x26   : > { %950 = vmatmul.mubr.msk.f32.gmra.mrb[6].mxu0 %vm183_vm0, %v146_v13 }
  0x27   : > { %320 = vmatprep.mubr.f32.mxu0 %v1444_v5  ;;  %1063 = vmatmul.mubr.msk.f32.gmra.mrb[6].mxu1 %vm183_vm0, %v150_v17 }
  0x28   : > { %1065 = vmatprep.mubr.msk.f32.mxu1 %vm183_vm0, %v151_v18 }
  0x2a   : > { %951 = vmatmul.mubr.msk.f32.gmra.mrb[8].mxu0 %vm183_vm0, %v147_v14 }
  0x2b   : > { %326 = vmatprep.mubr.f32.mxu0 %v1444_v5  ;;  %1066 = vmatmul.mubr.msk.f32.gmra.mrb[8].mxu1 %vm183_vm0, %v152_v19 }
  0x2c   : > { %1068 = vmatprep.mubr.msk.f32.mxu1 %vm183_vm0, %v153_v20 }
  0x2e   : > { %952 = vmatmul.mubr.msk.f32.gmra.mrb[10].mxu0 %vm183_vm0, %v148_v15 }
  0x2f   : > { %332 = vmatprep.mubr.f32.mxu0 %v1444_v5  ;;  %1069 = vmatmul.mubr.msk.f32.gmra.mrb[10].mxu1 %vm183_vm0, %v154_v21 }
  0x30   : > { %1071 = vmatprep.mubr.msk.f32.mxu1 %vm183_vm0, %v155_v22 }
  0x32   : > { %953 = vmatmul.mubr.msk.f32.gmra.mrb[12].mxu0 %vm183_vm0, %v149_v16 }
  0x33   : > { %338 = vmatprep.mubr.f32.mxu0 %v1444_v5  ;;  %1072 = vmatmul.mubr.msk.f32.gmra.mrb[12].mxu1 %vm183_vm0, %v156_v23 }
  0x34   : > { %1074 = vmatprep.mubr.msk.f32.mxu1 %vm183_vm0, %v157_v24 }
  0x36   : > { %954 = vmatmul.mubr.msk.f32.gmra.mrb[14].mxu0 %vm183_vm0, %v150_v17 }
  0x37   : > { %344 = vmatprep.mubr.f32.mxu0 %v1444_v5  ;;  %1075 = vmatmul.mubr.msk.f32.gmra.mrb[14].mxu1 %vm183_vm0, %v158_v25 }
  0x3a   : > { %955 = vmatmul.mubr.msk.f32.gmra.mrb[16].mxu0 %vm183_vm0, %v151_v18 }
  0x3b   : > { %350 = vmatprep.mubr.f32.mxu0 %v1444_v5 }
  0x3e   : > { %956 = vmatmul.mubr.msk.f32.gmra.mrb[18].mxu0 %vm183_vm0, %v152_v19 }
  0x3f   : > { %356 = vmatprep.mubr.f32.mxu0 %v1444_v5 }
  0x42   : > { %957 = vmatmul.mubr.msk.f32.gmra.mrb[20].mxu0 %vm183_vm0, %v153_v20 }
  0x43   : > { %362 = vmatprep.mubr.f32.mxu0 %v1444_v5 }
  0x46   : > { %958 = vmatmul.mubr.msk.f32.gmra.mrb[22].mxu0 %vm183_vm0, %v154_v21 }
  0x47   : > { %368 = vmatprep.mubr.f32.mxu0 %v1444_v5 }
  0x4a   : > { %959 = vmatmul.mubr.msk.f32.gmra.mrb[24].mxu0 %vm183_vm0, %v155_v22 }
  0x4b   : > { %374 = vmatprep.mubr.f32.mxu0 %v1444_v5 }
  0x4e   : > { %960 = vmatmul.mubr.msk.f32.gmra.mrb[26].mxu0 %vm183_vm0, %v156_v23 }
  0x4f   : > { %380 = vmatprep.mubr.f32.mxu0 %v1444_v5 }
  0x52   : > { %961 = vmatmul.mubr.msk.f32.gmra.mrb[28].mxu0 %vm183_vm0, %v157_v24 }
  0x53   : > { %386 = vmatprep.mubr.f32.mxu0 %v1444_v5 }
  0x56   : > { %962 = vmatmul.mubr.msk.f32.gmra.mrb[30].mxu0 %vm183_vm0, %v158_v25 }
  0x57   : > { %1109 = vmatprep.mubr.msk.f32.mxu0 %vm1446_vm1, %v1444_v5 }
  0xed   : > { %v298_v35 = vpop.f32.mrb[0].mxu0 }
  0xee   : > { %v299_v37 = vadd.f32 %v298_v35, %v1605_v33  ;;  %v300_v38 = vpop.f32.mrb[1].mxu0  ;;  %v1055_v39 = vpop.f32.mrb[0].mxu1 }
  0xef   : > { %v301_v40 = vadd.f32 %v300_v38, %v1607_v34  ;;  %v459_v41 = vpop.f32.mrb[1].mxu1  ;;  %v465_v44 = vadd.f32 %v1055_v39, %v1609_v36 }
  0xf0   : > { %v979_v43 = vmul.f32 -1.442695, %v299_v37  ;;  %v460_v48 = vadd.f32 %v459_v41, %v1609_v36 }
  0xf1   : > { %v995_v46 = vmul.f32 -1.442695, %v301_v40  ;;  %v304_v47 = vpop.f32.mrb[2].mxu0 }
  0xf2   : > { %1188 = vpow2.f32 %v979_v43  ;;  %v305_v49 = vadd.f32 %v304_v47, %v1605_v33  ;;  %v306_v50 = vpop.f32.mrb[3].mxu0  ;;  %v1058_v51 = vpop.f32.mrb[2].mxu1 }
  0xf3   : > { %1190 = vpow2.f32 %v995_v46  ;;  %v307_v52 = vadd.f32 %v306_v50, %v1607_v34  ;;  %v469_v53 = vpop.f32.mrb[3].mxu1  ;;  %v475_v55 = vadd.f32 %v1058_v51, %v1609_v36 }
  0xf4   : > { %v980_v54 = vmul.f32 -1.442695, %v305_v49  ;;  %1192 = vtanh.f32 %v465_v44  ;;  %v470_v58 = vadd.f32 %v469_v53, %v1609_v36 }
  0xf5   : > { %v996_v56 = vmul.f32 -1.442695, %v307_v52  ;;  %v310_v57 = vpop.f32.mrb[4].mxu0  ;;  %1194 = vtanh.f32 %v460_v48 }
  0xf6   : > { %1196 = vpow2.f32 %v980_v54  ;;  %v311_v59 = vadd.f32 %v310_v57, %v1605_v33  ;;  %v312_v60 = vpop.f32.mrb[5].mxu0  ;;  %v1061_v61 = vpop.f32.mrb[4].mxu1 }
  0xf7   : > { %1198 = vpow2.f32 %v996_v56  ;;  %v313_v62 = vadd.f32 %v312_v60, %v1607_v34  ;;  %v485_v63 = vadd.f32 %v1061_v61, %v1609_v36  ;;  %v479_v0 = vpop.f32.mrb[5].mxu1 }
  0xf8   : > { %v981_v1 = vmul.f32 -1.442695, %v311_v59  ;;  %1200 = vtanh.f32 %v475_v55  ;;  %v480_v4 = vadd.f32 %v479_v0, %v1609_v36 }
  0xf9   : > { %v997_v2 = vmul.f32 -1.442695, %v313_v62  ;;  %v316_v3 = vpop.f32.mrb[6].mxu0  ;;  %1202 = vtanh.f32 %v470_v58 }
  0xfa   : > { %1204 = vpow2.f32 %v981_v1  ;;  %v317_v5 = vadd.f32 %v316_v3, %v1605_v33  ;;  %v318_v6 = vpop.f32.mrb[7].mxu0  ;;  %v1064_v7 = vpop.f32.mrb[6].mxu1 }
  0xfb   : > { %v319_v8 = vadd.f32 %v318_v6, %v1607_v34  ;;  %1206 = vtanh.f32 %v485_v63  ;;  %v1628_v9 = vpop.f32.mrb[7].mxu1  ;;  %v495_v12 = vadd.f32 %v1064_v7, %v1609_v36 }
  0xfc   : > { %v1189_v10 = vpop.eup %1188  ;;  %1208 = vpow2.f32 %v997_v2  ;;  %v982_v11 = vmul.f32 -1.442695, %v317_v5 }
  0xfd   : > { %v1191_v13 = vpop.eup %1190  ;;  %v586_v14 = vadd.f32 1.0, %v1189_v10  ;;  %v998_v15 = vmul.f32 -1.442695, %v319_v8  ;;  %v322_v16 = vpop.f32.mrb[8].mxu0  ;;  %1210 = vtanh.f32 %v480_v4 }
  0xfe   : > { %v1631_v17 = vpop.eup %1192  ;;  %1212 = vpow2.f32 %v982_v11  ;;  %v323_v18 = vadd.f32 %v322_v16, %v1605_v33  ;;  %v324_v19 = vpop.f32.mrb[9].mxu0  ;;  %v682_v25 = vadd.f32 1.0, %v1191_v13 }
  0xff   : > { %v1634_v20 = vpop.f32.mrb[8].mxu1  ;;  %v1195_v21 = vpop.eup %1194  ;;  %1214 = vrcp.f32 %v586_v14  ;;  %v325_v22 = vadd.f32 %v324_v19, %v1607_v34 }
 0x100   : > { %v1637_v23 = vpop.f32.mrb[9].mxu1  ;;  %v1197_v24 = vpop.eup %1196  ;;  %v983_v27 = vmul.f32 -1.442695, %v323_v18  ;;  %1216 = vtanh.f32 %v495_v12 }
 0x101   : > { %v1199_v28 = vpop.eup %1198  ;;  %v587_v29 = vadd.f32 1.0, %v1197_v24  ;;  %1218 = vpow2.f32 %v998_v15  ;;  %v999_v30 = vmul.f32 -1.442695, %v325_v22  ;;  %v328_v31 = vpop.f32.mrb[10].mxu0 }
 0x102   : > { %v1639_v32 = vpop.eup %1200  ;;  %1220 = vpow2.f32 %v983_v27  ;;  %v329_v35 = vadd.f32 %v328_v31, %v1605_v33  ;;  %v330_v37 = vpop.f32.mrb[11].mxu0  ;;  %v683_v43 = vadd.f32 1.0, %v1199_v28 }
 0x103   : > { %v1642_v38 = vpop.f32.mrb[10].mxu1  ;;  %v1644_v39 = vpop.eup %1202  ;;  %1222 = vrcp.f32 %v587_v29  ;;  %v331_v40 = vadd.f32 %v330_v37, %v1607_v34 }
 0x104   : > { %v1647_v41 = vpop.f32.mrb[11].mxu1  ;;  %v1205_v42 = vpop.eup %1204  ;;  %1224 = vrcp.f32 %v682_v25  ;;  %v984_v44 = vmul.f32 -1.442695, %v329_v35 }
 0x105   : > { %v1649_v45 = vpop.eup %1206  ;;  %v588_v46 = vadd.f32 1.0, %v1205_v42  ;;  %1226 = vpow2.f32 %v999_v30  ;;  %v1000_v47 = vmul.f32 -1.442695, %v331_v40  ;;  %v334_v48 = vpop.f32.mrb[12].mxu0 }
 0x106   : > { %v1209_v49 = vpop.eup %1208  ;;  %1228 = vpow2.f32 %v984_v44  ;;  %v335_v50 = vadd.f32 %v334_v48, %v1605_v33  ;;  %v336_v51 = vpop.f32.mrb[13].mxu0 }
 0x107   : > { %v1073_v52 = vpop.f32.mrb[12].mxu1  ;;  %v1652_v53 = vpop.eup %1210  ;;  %1230 = vrcp.f32 %v588_v46  ;;  %v337_v54 = vadd.f32 %v336_v51, %v1607_v34  ;;  %v684_v61 = vadd.f32 1.0, %v1209_v49 }
 0x108   : > { %v1656_v55 = vadd.f32 %v1073_v52, %v1609_v36  ;;  %v519_v56 = vpop.f32.mrb[13].mxu1  ;;  %v1213_v57 = vpop.eup %1212  ;;  %1232 = vrcp.f32 %v683_v43  ;;  %v985_v58 = vmul.f32 -1.442695, %v335_v50 }
 0x109   : > { %v1659_v59 = vadd.f32 %v519_v56, %v1609_v36  ;;  %v1215_v60 = vpop.eup %1214  ;;  %v589_v62 = vadd.f32 1.0, %v1213_v57  ;;  %1234 = vpow2.f32 %v1000_v47  ;;  %v340_v63 = vpop.f32.mrb[14].mxu0  ;;  %v1001_v2 = vmul.f32 -1.442695, %v337_v54 }
 0x10a   : > { %v1661_v0 = vpop.eup %1216  ;;  %v746_v1 = vmul.f32 %v1215_v60, %v1195_v21  ;;  %1236 = vpow2.f32 %v985_v58  ;;  %v341_v3 = vadd.f32 %v340_v63, %v1605_v33  ;;  %v342_v4 = vpop.f32.mrb[15].mxu0 }
 0x10b   : > { %v1076_v5 = vpop.f32.mrb[14].mxu1  ;;  %v1219_v6 = vpop.eup %1218  ;;  %1238 = vrcp.f32 %v589_v62  ;;  %v343_v15 = vadd.f32 %v342_v4, %v1607_v34 }
 0x10c   : > { %v1665_v7 = vadd.f32 %v1076_v5, %v1609_v36  ;;  %v529_v8 = vpop.f32.mrb[15].mxu1  ;;  %v1221_v10 = vpop.eup %1220  ;;  %1240 = vtanh.f32 %v746_v1  ;;  %v986_v14 = vmul.f32 -1.442695, %v341_v3  ;;  %v685_v19 = vadd.f32 1.0, %v1219_v6 }
 0x10d   : > { %v1668_v11 = vadd.f32 %v529_v8, %v1609_v36  ;;  %v1223_v12 = vpop.eup %1222  ;;  %1242 = vrcp.f32 %v684_v61  ;;  %v590_v13 = vadd.f32 1.0, %v1221_v10  ;;  %v346_v16 = vpop.f32.mrb[16].mxu0  ;;  %v1002_v29 = vmul.f32 -1.442695, %v343_v15 }
 0x10e   : > { %v1225_v18 = vpop.eup %1224  ;;  %v747_v21 = vmul.f32 %v1223_v12, %v1631_v17  ;;  %1244 = vpow2.f32 %v1001_v2  ;;  %v348_v22 = vpop.f32.mrb[17].mxu0  ;;  %v347_v30 = vadd.f32 %v346_v16, %v1605_v33  ;;  %v490_v15 = vadd.f32 %v1628_v9, %v1609_v36 }
 0x10f   : > { %v1227_v24 = vpop.eup %1226  ;;  %1246 = vrcp.f32 %v590_v13  ;;  %v349_v43 = vadd.f32 %v348_v22, %v1607_v34 }
 0x110   : > { %v1229_v25 = vpop.eup %1228  ;;  %1248 = vtanh.f32 %v747_v21  ;;  %v686_v37 = vadd.f32 1.0, %v1227_v24  ;;  %v987_v48 = vmul.f32 -1.442695, %v347_v30 }
 0x111   : > { %v1231_v27 = vpop.eup %1230  ;;  %v591_v28 = vadd.f32 1.0, %v1229_v25  ;;  %1250 = vpow2.f32 %v986_v14  ;;  %v352_v31 = vpop.f32.mrb[18].mxu0  ;;  %v1003_v57 = vmul.f32 -1.442695, %v349_v43 }
 0x112   : > { %v1233_v35 = vpop.eup %1232  ;;  %1252 = vrcp.f32 %v685_v19  ;;  %v748_v40 = vmul.f32 %v1231_v27, %v1644_v39  ;;  %v354_v42 = vpop.f32.mrb[19].mxu0  ;;  %v353_v49 = vadd.f32 %v352_v31, %v1605_v33 }
 0x113   : > { %v1235_v17 = vpop.eup %1234  ;;  %1254 = vrcp.f32 %v591_v28  ;;  %v355_v58 = vadd.f32 %v354_v42, %v1607_v34 }
 0x114   : > { %v1237_v44 = vpop.eup %1236  ;;  %v687_v46 = vadd.f32 1.0, %v1235_v17  ;;  %1256 = vtanh.f32 %v748_v40  ;;  %v988_v63 = vmul.f32 -1.442695, %v353_v49 }
 0x115   : > { %v1239_v47 = vpop.eup %1238  ;;  %1258 = vpow2.f32 %v1002_v29  ;;  %v358_v50 = vpop.f32.mrb[20].mxu0  ;;  %v592_v54 = vadd.f32 1.0, %v1237_v44  ;;  %v1004_v5 = vmul.f32 -1.442695, %v355_v58 }
 0x116   : > { %v1241_v51 = vpop.eup %1240  ;;  %1260 = vrcp.f32 %v686_v37  ;;  %v749_v52 = vmul.f32 %v1239_v47, %v1639_v32  ;;  %v360_v39 = vpop.f32.mrb[21].mxu0  ;;  %v359_v6 = vadd.f32 %v358_v50, %v1605_v33 }
 0x117   : > { %v1243_v56 = vpop.eup %1242  ;;  %1262 = vrcp.f32 %v687_v46  ;;  %v778_v60 = vmul.f32 %v1241_v51, %v1225_v18  ;;  %v361_v13 = vadd.f32 %v360_v39, %v1607_v34 }
 0x118   : > { %v1678_v61 = vpop.eup %1244  ;;  %1264 = vtanh.f32 %v749_v52  ;;  %v989_v27 = vmul.f32 -1.442695, %v359_v6  ;;  %v505_v52 = vadd.f32 %v1634_v20, %v1609_v36 }
 0x119   : > { %v1247_v62 = vpop.eup %1246  ;;  %1266 = vpow2.f32 %v987_v48  ;;  %v364_v1 = vpop.f32.mrb[22].mxu0  ;;  %v1005_v30 = vmul.f32 -1.442695, %v361_v13 }
 0x11a   : > { %v1249_v2 = vpop.eup %1248  ;;  %1268 = vrcp.f32 %v592_v54  ;;  %v750_v3 = vmul.f32 %v1247_v62, %v1652_v53  ;;  %v366_v32 = vpop.f32.mrb[23].mxu0  ;;  %v365_v16 = vadd.f32 %v364_v1, %v1605_v33 }
 0x11b   : > { %v1251_v4 = vpop.eup %1250  ;;  %1270 = vpow2.f32 %v1003_v57  ;;  %v779_v8 = vmul.f32 %v1249_v2, %v1233_v35  ;;  %v367_v31 = vadd.f32 %v366_v32, %v1607_v34  ;;  %v688_v2 = vadd.f32 1.0, %v1678_v61 }
 0x11c   : > { %v1253_v10 = vpop.eup %1252  ;;  %v593_v12 = vadd.f32 1.0, %v1251_v4  ;;  %1272 = vtanh.f32 %v750_v3  ;;  %v500_v4 = vadd.f32 %v1637_v23, %v1609_v36 }
 0x11d   : > { %v1255_v14 = vpop.eup %1254  ;;  %1274 = vpow2.f32 %v988_v63  ;;  %v370_v53 = vpop.f32.mrb[24].mxu0  ;;  %v1121_v18 = vpack.c.bf16 %v779_v8, %v778_v60  ;;  %v1006_v50 = vmul.f32 -1.442695, %v367_v31  ;;  %v515_v31 = vadd.f32 %v1642_v38, %v1609_v36 }
 0x11e   : > { %v1257_v19 = vpop.eup %1256  ;;  %1276 = vrcp.f32 %v593_v12  ;;  %v751_v21 = vmul.f32 %v1255_v14, %v1649_v45  ;;  %v371_v22 = vadd.f32 %v370_v53, %v1605_v33  ;;  %v372_v24 = vpop.f32.mrb[25].mxu0  ;;  %v990_v45 = vmul.f32 -1.442695, %v365_v16 }
 0x11f   : > { %v1259_v25 = vpop.eup %1258  ;;  %1278 = vpow2.f32 %v1004_v5  ;;  %v1689_v28 = vadd.f32 %v372_v24, %v1607_v34  ;;  %1122 = vmatpush3.bf16.xpose.msra.mxu0 %v1121_v18  ;;  %v780_v29 = vmul.f32 %v1257_v19, %v1243_v56 }
 0x120   : > { %v1261_v9 = vpop.eup %1260  ;;  %1280 = vtanh.f32 %v751_v21  ;;  %1123 = vmatprep.subr.bf16.mxu0 %v1445_v26  ;;  %v689_v42 = vadd.f32 1.0, %v1259_v25  ;;  %v991_v61 = vmul.f32 -1.442695, %v371_v22 }
 0x121   : > { %v1263_v35 = vpop.eup %1262  ;;  %1282 = vtanh.f32 %v490_v15  ;;  %v376_v37 = vpop.f32.mrb[26].mxu0 }
 0x122   : > { %v1265_v40 = vpop.eup %1264  ;;  %v377_v17 = vadd.f32 %v376_v37, %v1605_v33  ;;  %v378_v43 = vpop.f32.mrb[27].mxu0  ;;  %1284 = vpow2.f32 %v989_v27  ;;  %v510_v37 = vadd.f32 %v1647_v41, %v1609_v36 }
 0x123   : > { %v1267_v44 = vpop.eup %1266  ;;  %v1695_v46 = vadd.f32 %v378_v43, %v1607_v34  ;;  %v781_v47 = vmul.f32 %v1265_v40, %v1253_v10  ;;  %1286 = vpow2.f32 %v1005_v30 }
 0x124   : > { %v1269_v48 = vpop.eup %1268  ;;  %v594_v49 = vadd.f32 1.0, %v1267_v44  ;;  %1288 = vpow2.f32 %v990_v45  ;;  %v992_v25 = vmul.f32 -1.442695, %v377_v17 }
 0x125   : > { %v1271_v51 = vpop.eup %1270  ;;  %v382_v54 = vpop.f32.mrb[28].mxu0  ;;  %v1124_v39 = vpack.c.bf16 %v781_v47, %v780_v29  ;;  %1290 = vrcp.f32 %v689_v42  ;;  %v1007_v29 = vmul.f32 -1.442695, %v1689_v28  ;;  %v1008_v38 = vmul.f32 -1.442695, %v1695_v46 }
 0x126   : > { %v1273_v56 = vpop.eup %1272  ;;  %v1700_v57 = vadd.f32 %v382_v54, %v1605_v33  ;;  %v384_v58 = vpop.f32.mrb[29].mxu0  ;;  %1292 = vrcp.f32 %v594_v49  ;;  %v690_v15 = vadd.f32 1.0, %v1271_v51 }
 0x127   : > { %v1275_v60 = vpop.eup %1274  ;;  %v1703_v62 = vadd.f32 %v384_v58, %v1607_v34  ;;  %1125 = vmatpush3.bf16.xpose.msra.mxu0 %v1124_v39  ;;  %v782_v63 = vmul.f32 %v1273_v56, %v1261_v9  ;;  %1294 = vpow2.f32 %v1006_v50 }
 0x128   : > { %v1277_v1 = vpop.eup %1276  ;;  %v595_v3 = vadd.f32 1.0, %v1275_v60  ;;  %1126 = vmatprep.subr.bf16.mxu0 %v1445_v26  ;;  %1296 = vtanh.f32 %v505_v52  ;;  %v993_v28 = vmul.f32 -1.442695, %v1700_v57 }
 0x129   : > { %v1279_v20 = vpop.eup %1278  ;;  %v753_v32 = vmul.f32 %v1277_v1, %v1661_v0  ;;  %v388_v5 = vpop.f32.mrb[30].mxu0  ;;  %v1009_v39 = vmul.f32 -1.442695, %v1703_v62 }
 0x12a   : > { %v1281_v6 = vpop.eup %1280  ;;  %1298 = vrcp.f32 %v595_v3  ;;  %v389_v8 = vadd.f32 %v388_v5, %v1605_v33  ;;  %v390_v10 = vpop.f32.mrb[31].mxu0  ;;  %v691_v53 = vadd.f32 1.0, %v1279_v20 }
 0x12b   : > { %v1283_v12 = vpop.eup %1282  ;;  %1300 = vtanh.f32 %v753_v32  ;;  %v1712_v13 = vadd.f32 %v390_v10, %v1607_v34  ;;  %v783_v14 = vmul.f32 %v1281_v6, %v1263_v35 }
 0x12c   : > { %1302 = vrcp.f32 %v688_v2  ;;  %v752_v0 = vmul.f32 %v1283_v12, %v1269_v48  ;;  %v1285_v16 = vpop.eup %1284  ;;  %v994_v51 = vmul.f32 -1.442695, %v389_v8 }
 0x12d   : > { %1304 = vtanh.f32 %v500_v4  ;;  %v1127_v23 = vpack.c.bf16 %v783_v14, %v782_v63  ;;  %v1287_v18 = vpop.eup %1286  ;;  %v596_v19 = vadd.f32 1.0, %v1285_v16  ;;  %v1010_v58 = vmul.f32 -1.442695, %v1712_v13 }
 0x12e   : > { %1306 = vtanh.f32 %v752_v0  ;;  %v1289_v21 = vpop.eup %1288  ;;  %v692_v33 = vadd.f32 1.0, %v1287_v18 }
 0x12f   : > { %1308 = vpow2.f32 %v991_v61  ;;  %1128 = vmatpush3.bf16.xpose.msra.mxu0 %v1127_v23  ;;  %v1291_v24 = vpop.eup %1290  ;;  %v597_v22 = vadd.f32 1.0, %v1289_v21 }
 0x130   : > { %1310 = vrcp.f32 %v690_v15  ;;  %1129 = vmatprep.subr.bf16.mxu0 %v1445_v26  ;;  %v1293_v34 = vpop.eup %1292 }
 0x131   : > { %1312 = vrcp.f32 %v691_v53  ;;  %v1295_v27 = vpop.eup %1294 }
 0x132   : > { %1314 = vrcp.f32 %v596_v19  ;;  %v1297_v9 = vpop.eup %1296  ;;  %v693_v44 = vadd.f32 1.0, %v1295_v27 }
 0x133   : > { %1316 = vrcp.f32 %v692_v33 }
 0x134   : > { %v1299_v30 = vpop.eup %1298  ;;  %1318 = vrcp.f32 %v597_v22 }
 0x135   : > { %v1301_v35 = vpop.eup %1300  ;;  %v755_v45 = vmul.f32 %v1299_v30, %v1297_v9  ;;  %1320 = vpow2.f32 %v992_v25 }
 0x136   : > { %v1303_v40 = vpop.eup %1302  ;;  %1322 = vpow2.f32 %v1007_v29  ;;  %v785_v42 = vmul.f32 %v1301_v35, %v1291_v24 }
 0x137   : > { %v1305_v17 = vpop.eup %1304  ;;  %1324 = vtanh.f32 %v755_v45 }
 0x138   : > { %v1307_v43 = vpop.eup %1306  ;;  %v754_v47 = vmul.f32 %v1305_v17, %v1293_v34  ;;  %1326 = vtanh.f32 %v515_v31 }
 0x139   : > { %v1309_v48 = vpop.eup %1308  ;;  %1328 = vtanh.f32 %v510_v37  ;;  %v784_v49 = vmul.f32 %v1307_v43, %v1303_v40 }
 0x13a   : > { %v1311_v50 = vpop.eup %1310  ;;  %1330 = vtanh.f32 %v754_v47  ;;  %v598_v41 = vadd.f32 1.0, %v1309_v48 }
 0x13b   : > { %v1313_v36 = vpop.eup %1312  ;;  %1332 = vpow2.f32 %v993_v28  ;;  %v1130_v52 = vpack.c.bf16 %v785_v42, %v784_v49 }
 0x13c   : > { %v1315_v54 = vpop.eup %1314  ;;  %1334 = vrcp.f32 %v693_v44 }
 0x13d   : > { %v1317_v56 = vpop.eup %1316  ;;  %1336 = vpow2.f32 %v1008_v38  ;;  %1131 = vmatpush3.bf16.xpose.msra.mxu0 %v1130_v52 }
 0x13e   : > { %v1319_v57 = vpop.eup %1318  ;;  %1338 = vpow2.f32 %v994_v51  ;;  %1132 = vmatprep.subr.bf16.mxu0 %v1445_v26 }
 0x13f   : > { %v1321_v46 = vpop.eup %1320  ;;  %1340 = vrcp.f32 %v598_v41  ;;  %v799_v41 = vpop.permute.xlu0 %798 }
 0x140   : > { %v1323_v60 = vpop.eup %1322  ;;  %v599_v63 = vadd.f32 1.0, %v1321_v46  ;;  %1342 = vpow2.f32 %v1009_v39 }
 0x141   : > { %v1325_v1 = vpop.eup %1324  ;;  %1344 = vtanh.f32 %v1656_v55  ;;  %v694_v53 = vadd.f32 1.0, %v1323_v60 }
 0x142   : > { %v1327_v2 = vpop.eup %1326  ;;  %1346 = vrcp.f32 %v599_v63  ;;  %v787_v62 = vmul.f32 %v1325_v1, %v1313_v36  ;;  %v794_v36 = vld [vmem:[%s1783_s1 + $0x48] ss:$0 sm:$0xff] }
 0x143   : > { %v1329_v3 = vpop.eup %1328  ;;  %v757_v20 = vmul.f32 %v1327_v2, %v1319_v57  ;;  %1348 = vpow2.f32 %v1010_v58 }
 0x144   : > { %v1331_v32 = vpop.eup %1330  ;;  %v756_v4 = vmul.f32 %v1329_v3, %v1315_v54  ;;  %1350 = vtanh.f32 %v1659_v59 }
 0x145   : > { %v1333_v5 = vpop.eup %1332  ;;  %1352 = vtanh.f32 %v757_v20  ;;  %v786_v6 = vmul.f32 %v1331_v32, %v1311_v50 }
 0x146   : > { %v1335_v8 = vpop.eup %1334  ;;  %1354 = vtanh.f32 %v756_v4  ;;  %v600_v10 = vadd.f32 1.0, %v1333_v5 }
 0x147   : > { %v1337_v12 = vpop.eup %1336  ;;  %1356 = vtanh.f32 %v1665_v7  ;;  %v1133_v55 = vpack.c.bf16 %v787_v62, %v786_v6 }
 0x148   : > { %v1339_v61 = vpop.eup %1338  ;;  %1358 = vrcp.f32 %v600_v10  ;;  %v695_v0 = vadd.f32 1.0, %v1337_v12 }
 0x149   : > { %v1341_v13 = vpop.eup %1340  ;;  %v601_v14 = vadd.f32 1.0, %v1339_v61  ;;  %1360 = vtanh.f32 %v1668_v11  ;;  %1134 = vmatpush3.bf16.xpose.msra.mxu0 %v1133_v55 }
 0x14a   : > { %v1343_v15 = vpop.eup %1342  ;;  %1135 = vmatprep.subr.bf16.mxu0 %v1445_v26 }
 0x14b   : > { %v1345_v59 = vpop.eup %1344  ;;  %1362 = vrcp.f32 %v601_v14  ;;  %v696_v22 = vadd.f32 1.0, %v1343_v15 }
 0x14c   : > { %v1347_v16 = vpop.eup %1346  ;;  %1364 = vrcp.f32 %v695_v0 }
 0x14d   : > { %v1349_v23 = vpop.eup %1348  ;;  %v759_v18 = vmul.f32 %v1347_v16, %v1345_v59 }
 0x14e   : > { %v1351_v19 = vpop.eup %1350  ;;  %v697_v29 = vadd.f32 1.0, %v1349_v23 }
 0x14f   : > { %v1353_v7 = vpop.eup %1352  ;;  %1366 = vtanh.f32 %v759_v18  ;;  %v758_v21 = vmul.f32 %v1351_v19, %v1341_v13 }
 0x150   : > { %v1355_v33 = vpop.eup %1354  ;;  %1368 = vrcp.f32 %v694_v53  ;;  %v789_v24 = vmul.f32 %v1353_v7, %v1335_v8 }
 0x151   : > { %v1357_v11 = vpop.eup %1356  ;;  %1370 = vtanh.f32 %v758_v21  ;;  %v788_v34 = vmul.f32 %v1355_v33, %v1317_v56 }
 0x152   : > { %v1359_v25 = vpop.eup %1358  ;;  %1372 = vrcp.f32 %v696_v22 }
 0x153   : > { %v1361_v27 = vpop.eup %1360  ;;  %v1136_v9 = vpack.c.bf16 %v789_v24, %v788_v34 }
 0x154   : > { %v760_v30 = vmul.f32 %v1361_v27, %v1359_v25 }
 0x155   : > { %v1363_v31 = vpop.eup %1362  ;;  %1137 = vmatpush3.bf16.xpose.msra.mxu0 %v1136_v9 }
 0x156   : > { %v761_v35 = vmul.f32 %v1363_v31, %v1357_v11  ;;  %1374 = vtanh.f32 %v760_v30  ;;  %1138 = vmatprep.subr.bf16.mxu0 %v1445_v26  ;;  %v1365_v45 = vpop.eup %1364 }
 0x157   : > { %1376 = vrcp.f32 %v697_v29 }
 0x158   : > { %1378 = vtanh.f32 %v761_v35 }
 0x159   : > { %v1367_v37 = vpop.eup %1366 }
 0x15a   : > { %v1369_v40 = vpop.eup %1368  ;;  %v791_v42 = vmul.f32 %v1367_v37, %v1365_v45 }
 0x15b   : > { %v1371_v17 = vpop.eup %1370 }
 0x15c   : > { %v790_v28 = vmul.f32 %v1371_v17, %v1369_v40  ;;  %v1373_v44 = vpop.eup %1372 }
 0x15e   : > { %v1139_v43 = vpack.c.bf16 %v791_v42, %v790_v28 }
 0x160   : > { %v1375_v47 = vpop.eup %1374  ;;  %1140 = vmatpush3.bf16.xpose.msra.mxu0 %v1139_v43 }
 0x161   : > { %v1377_v48 = vpop.eup %1376  ;;  %1141 = vmatprep.subr.bf16.mxu0 %v1445_v26  ;;  %v792_v38 = vmul.f32 %v1375_v47, %v1373_v44 }
 0x162   : > { %v1379_v49 = vpop.eup %1378 }
 0x163   : > { %v793_v50 = vmul.f32 %v1379_v49, %v1377_v48 }
 0x165   : > { %v1142_v51 = vpack.c.bf16 %v793_v50, %v792_v38 }
 0x168   : > { %1143 = vmatpush3.bf16.xpose.msra.mxu0 %v1142_v51 }
 0x16f   : > { %1110 = vmatmul.mubr.f32.vlgmr.msra.gmra.mrb[32].mxu0 %v794_v36 }
 0x242   : > { %v867_v52 = vpop.f32.mrb[32].mxu0 }
 0x243   : > { %v868_v54 = vadd.f32 %v867_v52, %v799_v41  ;;  %v1111_v39 = vpop.f32.mrb[33].mxu0 }
 0x245   : > { %871 = vst [vmem:[%s136_s26] sm:$0x1] %v868_v54 }
 0x246   : > { %1393 = shalt.err (!%p1390_p3)
}
 0x247   : > { %s1394_s27 = scalar_lea.hbm %s1740_s3, 16  ;;  %s1398_s16 = scalar_lea.hbm %s1784_s2, 32 }
 0x248   : > { %p1395_p4 = scmp.ne.s32.totalorder %s1740_s3, %s1394_s27  ;;  %p1399_p9 = scmp.lt.u32.totalorder %s1740_s3, %s1784_s2 }
 0x249   : > { %p1400_p10 = scmp.lt.u32.totalorder %s1398_s16, %s1394_s27  ;;  %p1402_p12 = scmp.lt.u32.totalorder %s1394_s27, %s1740_s3 }
 0x24a   : > { %p1396_p7 = pnand %p1395_p4, %p1499_p5 }
 0x24b   : > { %p1401_p11 = por %p1400_p10, %p1399_p9 }
 0x24c   : > { %p1397_p8 = pneg %p1396_p7 }
 0x24d   : > { %p1403_p13 = por %p1402_p12, %p1401_p11 }
 0x24f   : > { %p1404_p0 = pnand %p1403_p13, %p1397_p8 }
 0x251   : > { %1407 = shalt.err (!%p1404_p0)
}
 0x252   : > { %1144 = dma.vmem_to_hbm [thread:$0]  (%p1499_p5), %s1742_s28, 16, %s1740_s3, %s873_s4  }
 0x253 PF: > { %p1150_p1 = scmp.ge.s32.totalorder %s1442_s12, 2  ;;  %s897_s22 = sand.u32 1, %s1430_s9  }
 0x254   : > { %s898_s23 = scalar_lea.sflag [#allocation3], %s897_s22 }
 0x255   : > { %p1147_p2 = pnand %p1150_p1, %p1503_p6 }
 0x257   : > { %1425 = dma.done.wait (!%p1147_p2), %s898_s23, 16  }
 0x258   : > { %1427 = vsyncadd (!%p1147_p2), %s898_s23, 4294967280  ;;  %p12_p3 = scmp.ge.s32.totalorder %s1487_s15, 4   ;;  %s1787_s9 = smov %s1434_s10 }
 0x259   : > { %s1788_s10 = smov %s1438_s11  ;;  %s1789_s11 = smov %s1497_s18 }
 0x25a   : > { %s1790_s12 = smov %s1487_s15  ;;  %14 = sbr.rel (!%p12_p3) target bundleno = 3 (0x3), region = 64 }
 0x261   :  { %902 = vsyncpa [#allocation3], 1 }
 0x262   :  { %904 = vsyncpa [#allocation3 + $0x1], 1 }

</bundles_post_ra>
